<compile_context>
chip_gen: v5e
topology: v5e:2x2
jax: 0.10.0
libtpu: 0.0.40
codegen_flags: <defaults>
</compile_context>

<pallas_src>
import functools

import jax
import jax.numpy as jnp
from jax import lax
from jax.experimental import pallas as pl
from jax.experimental.pallas import tpu as pltpu


def _convlstm_kernel(slab_ref, c_ref, w_ref, b_ref, c_out_ref, h_out_ref, *,
                     K, Hd):
    """One batch block per grid step, lane-dense layout.

    slab_ref  : (1, Cin_pad, W)   replicate-padded [x; h] slab (matmul dtype).
                Column j*Lp + r holds padded position r of block-local sample j.
    c_ref     : (1, Hd, W)        previous cell state (valid at r < L per stripe).
    w_ref     : (4H, K*Cin_pad)   conv weight, im2col layout (matmul dtype).
    b_ref     : (4H, 1)           conv bias (f32).
    c_out_ref : (1, Hd, W)
    h_out_ref : (1, Hd, W)        (== y)
    The 2*(K//2) trailing columns of each per-sample stripe carry finite garbage
    and are stripped by the wrapper.
    """
    slab = slab_ref[0]                                    # (Cin_pad, W)

    # In-kernel im2col: tap k is the slab shifted left by k lanes.  The circular
    # wrap fill only lands in unused stripe-tail columns, so it never affects a
    # valid output column.  Single lane-dense contraction of depth K*Cin_pad.
    if K == 1:
        col = slab
    else:
        taps = [slab]
        for k in range(1, K):
            taps.append(jnp.concatenate([slab[:, k:], slab[:, :k]], axis=1))
        col = jnp.concatenate(taps, axis=0)               # (K*Cin_pad, W)

    gates = jnp.dot(w_ref[...], col,
                    preferred_element_type=jnp.float32)   # (4H, W) f32 accum
    gates = gates + b_ref[...].astype(jnp.float32)        # one broadcast add

    cc_i = gates[0 * Hd:1 * Hd]
    cc_f = gates[1 * Hd:2 * Hd]
    cc_o = gates[2 * Hd:3 * Hd]
    cc_g = gates[3 * Hd:4 * Hd]

    # sigmoid(x) = 0.5 * tanh(0.5 * x) + 0.5 -> one EUP op per gate (f32).
    i_g = 0.5 * jnp.tanh(0.5 * cc_i) + 0.5
    f_g = 0.5 * jnp.tanh(0.5 * cc_f) + 0.5
    o_g = 0.5 * jnp.tanh(0.5 * cc_o) + 0.5
    g_g = jnp.tanh(cc_g)

    c_prev = c_ref[0].astype(jnp.float32)
    c_new = f_g * c_prev + i_g * g_g
    h_new = o_g * jnp.tanh(c_new)

    c_out_ref[0] = c_new.astype(c_out_ref.dtype)
    h_out_ref[0] = h_new.astype(h_out_ref.dtype)


def conv1d_lstm_cell(x, cur_state, weight, bias, *, kernel_size,
                     matmul_dtype=None):
    """Pallas implementation of Conv1d_LSTMcell.forward (NCL in, NCL out).

    x       : (B, input_dim, L)
    cur_state = (c, h), each (B, hidden_dim, L)
    weight  : (4*hidden_dim, input_dim + hidden_dim, K)  (PyTorch Conv1d layout)
    bias    : (4*hidden_dim,)
    matmul_dtype : optional MXU-operand dtype (e.g. jnp.bfloat16 on v6e/v7x);
                   accumulation, gate math and the carried cell state stay f32.
    returns (y, (c_new, h_new)) with y == h_new.
    """
    c, h = cur_state
    B, Cx, L = x.shape
    Hd = c.shape[1]
    K = kernel_size
    if K % 2 != 1:
        # PyTorch Conv1d(padding=K//2) with even K changes the length; the
        # module itself would break, so only the odd case is supported.
        raise ValueError("Conv1d_LSTMcell requires an odd kernel_size.")
    pad = K // 2
    Lp = L + 2 * pad                      # per-sample stripe width
    Cin = Cx + Hd
    Cin_pad = (Cin + 7) // 8 * 8          # sublane-align the contraction
    mm_dtype = jnp.float32 if matmul_dtype is None else matmul_dtype
    mm_size = jnp.dtype(mm_dtype).itemsize

    # ---- batch-block (lane-width) selection --------------------------------
    lane_target = 512                     # ~85% of HBM roofline per ref data
    bb = max(1, min(B, max(1, lane_target // Lp)))
    if B >= 2:
        bb = min(bb, (B + 1) // 2)        # >=2 grid steps -> both v7x TCs busy

    def _blk_bytes(bb_):
        wb = bb_ * Lp
        return (Cin_pad * wb * mm_size          # activation slab block
                + K * Cin_pad * wb * mm_size    # in-kernel im2col copy
                + Hd * wb * 4                   # c_prev block
                + 2 * Hd * wb * 4               # c_new / h_new blocks
                + 4 * Hd * wb * 4)              # gates (f32)

    while bb > 1 and _blk_bytes(bb) > 4 * 1024 * 1024:   # conservative (v7x 64 MiB)
        bb -= 1
    # TODO(synk): for very large L a single sample can still exceed the budget;
    # add an L-tile grid axis with a (K-1)-lane halo in that regime.

    nb = pl.cdiv(B, bb)
    B_pad = nb * bb
    Wb = bb * Lp

    # ---- wrapper-side layout plumbing (lane-dense slabs) --------------------
    comb = jnp.concatenate([x, h], axis=1)                           # (B, Cin, L)
    comb = jnp.pad(comb, ((0, B_pad - B), (0, Cin_pad - Cin), (0, 0)))
    comb = jnp.pad(comb, ((0, 0), (0, 0), (pad, pad)), mode="edge")  # replicate
    slab = (comb.reshape(nb, bb, Cin_pad, Lp)
                .transpose(0, 2, 1, 3)
                .reshape(nb, Cin_pad, Wb)
                .astype(mm_dtype))

    c_p = jnp.pad(c, ((0, B_pad - B), (0, 0), (0, Lp - L)))
    c_slab = (c_p.reshape(nb, bb, Hd, Lp)
                 .transpose(0, 2, 1, 3)
                 .reshape(nb, Hd, Wb))

    # weight -> (4H, K*Cin_pad) im2col layout; zero columns for padded channels.
    w_p = jnp.pad(weight, ((0, 0), (0, Cin_pad - Cin), (0, 0)))
    w2 = (jnp.transpose(w_p, (0, 2, 1))
             .reshape(4 * Hd, K * Cin_pad)
             .astype(mm_dtype))
    b2 = bias.reshape(4 * Hd, 1).astype(jnp.float32)

    kernel = functools.partial(_convlstm_kernel, K=K, Hd=Hd)

    c_new_slab, h_new_slab = pl.pallas_call(
        kernel,
        out_shape=(jax.ShapeDtypeStruct((nb, Hd, Wb), c.dtype),
                   jax.ShapeDtypeStruct((nb, Hd, Wb), h.dtype)),
        grid_spec=pltpu.PrefetchScalarGridSpec(
            num_scalar_prefetch=0,
            grid=(nb,),
            in_specs=[
                pl.BlockSpec((1, Cin_pad, Wb), lambda i: (i, 0, 0)),      # slab
                pl.BlockSpec((1, Hd, Wb), lambda i: (i, 0, 0)),           # c
                pl.BlockSpec((4 * Hd, K * Cin_pad), lambda i: (0, 0)),    # w2
                pl.BlockSpec((4 * Hd, 1), lambda i: (0, 0)),              # bias
            ],
            out_specs=[
                pl.BlockSpec((1, Hd, Wb), lambda i: (i, 0, 0)),           # c_new
                pl.BlockSpec((1, Hd, Wb), lambda i: (i, 0, 0)),           # h_new
            ],
        ),
        compiler_params=pltpu.CompilerParams(
            dimension_semantics=("parallel",),
            vmem_limit_bytes=32 * 1024 * 1024),
    )(slab, c_slab, w2, b2)

    def _unslab(s):
        s = s.reshape(nb, Hd, bb, Lp).transpose(0, 2, 1, 3).reshape(B_pad, Hd, Lp)
        return s[:B, :, :L]

    c_new = _unslab(c_new_slab)
    h_new = _unslab(h_new_slab)
    y = h_new
    return y, (c_new, h_new)


def _reference(x, cur_state, weight, bias, *, kernel_size):
    """Pure-JAX reference matching the PyTorch forward exactly (NCL layout)."""
    c, h = cur_state
    pad = kernel_size // 2
    combined = jnp.concatenate([x, h], axis=1)                  # (B, Cin, L)
    combined_pad = jnp.pad(combined, ((0, 0), (0, 0), (pad, pad)), mode="edge")
    conv = lax.conv_general_dilated(
        combined_pad, weight,
        window_strides=(1,), padding="VALID",
        dimension_numbers=("NCH", "OIH", "NCH"))
    conv = conv + bias[None, :, None]
    cc_i, cc_f, cc_o, cc_g = jnp.split(conv, 4, axis=1)
    i = jax.nn.sigmoid(cc_i)
    f = jax.nn.sigmoid(cc_f)
    o = jax.nn.sigmoid(cc_o)
    g = jnp.tanh(cc_g)
    c_new = f * c + i * g
    h_new = o * jnp.tanh(c_new)
    return h_new, (c_new, h_new)


def _make_case(key, batch, input_dim, hidden_dim, seq_len, kernel_size):
    kx, kc, kh, kw, kb = jax.random.split(key, 5)
    x = jax.random.normal(kx, (batch, input_dim, seq_len), dtype=jnp.float32)
    c0 = jax.random.normal(kc, (batch, hidden_dim, seq_len), dtype=jnp.float32)
    h0 = jax.random.normal(kh, (batch, hidden_dim, seq_len), dtype=jnp.float32)
    cin = input_dim + hidden_dim
    weight = 0.05 * jax.random.normal(
        kw, (4 * hidden_dim, cin, kernel_size), dtype=jnp.float32)
    bias = 0.05 * jax.random.normal(kb, (4 * hidden_dim,), dtype=jnp.float32)
    return x, c0, h0, weight, bias


if __name__ == "__main__":
    key = jax.random.PRNGKey(0)
    k1, k2 = jax.random.split(key, 2)

    # ---- case 1: module-default-ish shapes (B=2, Cx=4, H=32, L=16, K=3) ----
    x, c0, h0, weight, bias = _make_case(k1, batch=2, input_dim=4,
                                         hidden_dim=32, seq_len=16,
                                         kernel_size=3)
    y_ref, (c_ref, h_ref) = _reference(x, (c0, h0), weight, bias, kernel_size=3)

    fwd = jax.jit(functools.partial(conv1d_lstm_cell, kernel_size=3))
    y, (c_new, h_new) = fwd(x, (c0, h0), weight, bias)
    jax.block_until_ready((y, c_new, h_new))
    assert jnp.allclose(y, y_ref, atol=1e-4, rtol=1e-4)
    assert jnp.allclose(c_new, c_ref, atol=1e-4, rtol=1e-4)
    assert jnp.allclose(h_new, h_ref, atol=1e-4, rtol=1e-4)

    # bf16 MXU-operand path (v6e/v7x recommendation): f32 accumulate + gates.
    fwd_bf16 = jax.jit(functools.partial(conv1d_lstm_cell, kernel_size=3,
                                         matmul_dtype=jnp.bfloat16))
    y16, (c16, h16) = fwd_bf16(x, (c0, h0), weight, bias)
    jax.block_until_ready((y16, c16, h16))
    assert jnp.allclose(y16, y_ref, atol=5e-2, rtol=5e-2)
    assert jnp.allclose(c16, c_ref, atol=5e-2, rtol=5e-2)

    # ---- case 2: awkward sizes (B=5 prime, Cx=3, H=16, L=10, K=5) ----------
    x2, c02, h02, w2_, b2_ = _make_case(k2, batch=5, input_dim=3,
                                        hidden_dim=16, seq_len=10,
                                        kernel_size=5)
    y2_ref, (c2_ref, h2_ref) = _reference(x2, (c02, h02), w2_, b2_,
                                          kernel_size=5)
    fwd2 = jax.jit(functools.partial(conv1d_lstm_cell, kernel_size=5))
    y2, (c2, h2) = fwd2(x2, (c02, h02), w2_, b2_)
    jax.block_until_ready((y2, c2, h2))
    assert jnp.allclose(y2, y2_ref, atol=1e-4, rtol=1e-4)
    assert jnp.allclose(c2, c2_ref, atol=1e-4, rtol=1e-4)
    assert jnp.allclose(h2, h2_ref, atol=1e-4, rtol=1e-4)

    print("KERNEL_OK")
</pallas_src>

<mosaic_0001>
module attributes {stable_mosaic.version = 11 : i64} {
  func.func @_convlstm_kernel(%arg0: i32, %arg1: memref<1x40x18xf32, #tpu.memory_space<vmem>>, %arg2: memref<1x32x18xf32, #tpu.memory_space<vmem>>, %arg3: memref<128x120xf32, #tpu.memory_space<vmem>>, %arg4: memref<128x1xf32, #tpu.memory_space<vmem>>, %arg5: memref<1x32x18xf32, #tpu.memory_space<vmem>>, %arg6: memref<1x32x18xf32, #tpu.memory_space<vmem>>) attributes {dimension_semantics = [#tpu.dimension_semantics<parallel>], iteration_bounds = array<i64: 2>, scalar_prefetch = 0 : i64, scratch_operands = 0 : i64, tpu.core_type = #tpu.core_type<tc>, window_params = [{transform_indices = @transform_0, window_bounds = array<i64: 1, 40, 18>}, {transform_indices = @transform_1, window_bounds = array<i64: 1, 32, 18>}, {pipeline_mode = #tpu.pipeline_mode<synchronous>, transform_indices = @transform_2, window_bounds = array<i64: 128, 120>}, {pipeline_mode = #tpu.pipeline_mode<synchronous>, transform_indices = @transform_3, window_bounds = array<i64: 128, 1>}, {transform_indices = @transform_4, window_bounds = array<i64: 1, 32, 18>}, {transform_indices = @transform_5, window_bounds = array<i64: 1, 32, 18>}]} {
    %c0 = arith.constant 0 : index
    %c0_0 = arith.constant 0 : index
    %c0_1 = arith.constant 0 : index
    %0 = vector.load %arg1[%c0, %c0_0, %c0_1] : memref<1x40x18xf32, #tpu.memory_space<vmem>>, vector<1x40x18xf32>
    %1 = vector.shape_cast %0 : vector<1x40x18xf32> to vector<40x18xf32>
    %2 = vector.extract_strided_slice %1 {offsets = [0, 1], sizes = [40, 17], strides = [1, 1]} : vector<40x18xf32> to vector<40x17xf32>
    %3 = vector.extract_strided_slice %1 {offsets = [0, 0], sizes = [40, 1], strides = [1, 1]} : vector<40x18xf32> to vector<40x1xf32>
    %4 = tpu.concatenate %2, %3 in 1 : vector<40x17xf32>, vector<40x1xf32> -> vector<40x18xf32>
    %5 = vector.extract_strided_slice %1 {offsets = [0, 2], sizes = [40, 16], strides = [1, 1]} : vector<40x18xf32> to vector<40x16xf32>
    %6 = vector.extract_strided_slice %1 {offsets = [0, 0], sizes = [40, 2], strides = [1, 1]} : vector<40x18xf32> to vector<40x2xf32>
    %7 = tpu.concatenate %5, %6 in 1 : vector<40x16xf32>, vector<40x2xf32> -> vector<40x18xf32>
    %8 = tpu.concatenate %1, %4, %7 in 0 : vector<40x18xf32>, vector<40x18xf32>, vector<40x18xf32> -> vector<120x18xf32>
    %c0_2 = arith.constant 0 : index
    %c0_3 = arith.constant 0 : index
    %9 = vector.load %arg3[%c0_2, %c0_3] : memref<128x120xf32, #tpu.memory_space<vmem>>, vector<128x120xf32>
    %cst = arith.constant dense<0.000000e+00> : vector<128x18xf32>
    %10 = tpu.matmul %9, %8, %cst {dimension_numbers = #tpu.dot_dimension_numbers<[1], [0], [0], [1], [0, 0, 1, 1], [], []>} : vector<128x120xf32>, vector<120x18xf32>, vector<128x18xf32> -> vector<128x18xf32>
    %c0_4 = arith.constant 0 : index
    %c0_5 = arith.constant 0 : index
    %11 = vector.load %arg4[%c0_4, %c0_5] : memref<128x1xf32, #tpu.memory_space<vmem>>, vector<128x1xf32>
    %12 = vector.broadcast %11 : vector<128x1xf32> to vector<128x18xf32>
    %13 = arith.addf %10, %12 : vector<128x18xf32>
    %14 = vector.extract_strided_slice %13 {offsets = [0, 0], sizes = [32, 18], strides = [1, 1]} : vector<128x18xf32> to vector<32x18xf32>
    %15 = vector.extract_strided_slice %13 {offsets = [32, 0], sizes = [32, 18], strides = [1, 1]} : vector<128x18xf32> to vector<32x18xf32>
    %16 = vector.extract_strided_slice %13 {offsets = [64, 0], sizes = [32, 18], strides = [1, 1]} : vector<128x18xf32> to vector<32x18xf32>
    %17 = vector.extract_strided_slice %13 {offsets = [96, 0], sizes = [32, 18], strides = [1, 1]} : vector<128x18xf32> to vector<32x18xf32>
    %cst_6 = arith.constant 5.000000e-01 : f32
    %18 = vector.broadcast %cst_6 : f32 to vector<32x18xf32>
    %19 = arith.mulf %18, %14 : vector<32x18xf32>
    %20 = math.tanh %19 : vector<32x18xf32>
    %cst_7 = arith.constant 5.000000e-01 : f32
    %21 = vector.broadcast %cst_7 : f32 to vector<32x18xf32>
    %22 = arith.mulf %21, %20 : vector<32x18xf32>
    %cst_8 = arith.constant 5.000000e-01 : f32
    %23 = vector.broadcast %cst_8 : f32 to vector<32x18xf32>
    %24 = arith.addf %22, %23 : vector<32x18xf32>
    %cst_9 = arith.constant 5.000000e-01 : f32
    %25 = vector.broadcast %cst_9 : f32 to vector<32x18xf32>
    %26 = arith.mulf %25, %15 : vector<32x18xf32>
    %27 = math.tanh %26 : vector<32x18xf32>
    %cst_10 = arith.constant 5.000000e-01 : f32
    %28 = vector.broadcast %cst_10 : f32 to vector<32x18xf32>
    %29 = arith.mulf %28, %27 : vector<32x18xf32>
    %cst_11 = arith.constant 5.000000e-01 : f32
    %30 = vector.broadcast %cst_11 : f32 to vector<32x18xf32>
    %31 = arith.addf %29, %30 : vector<32x18xf32>
    %cst_12 = arith.constant 5.000000e-01 : f32
    %32 = vector.broadcast %cst_12 : f32 to vector<32x18xf32>
    %33 = arith.mulf %32, %16 : vector<32x18xf32>
    %34 = math.tanh %33 : vector<32x18xf32>
    %cst_13 = arith.constant 5.000000e-01 : f32
    %35 = vector.broadcast %cst_13 : f32 to vector<32x18xf32>
    %36 = arith.mulf %35, %34 : vector<32x18xf32>
    %cst_14 = arith.constant 5.000000e-01 : f32
    %37 = vector.broadcast %cst_14 : f32 to vector<32x18xf32>
    %38 = arith.addf %36, %37 : vector<32x18xf32>
    %39 = math.tanh %17 : vector<32x18xf32>
    %c0_15 = arith.constant 0 : index
    %c0_16 = arith.constant 0 : index
    %c0_17 = arith.constant 0 : index
    %40 = vector.load %arg2[%c0_15, %c0_16, %c0_17] : memref<1x32x18xf32, #tpu.memory_space<vmem>>, vector<1x32x18xf32>
    %41 = vector.shape_cast %40 : vector<1x32x18xf32> to vector<32x18xf32>
    %42 = arith.mulf %31, %41 : vector<32x18xf32>
    %43 = arith.mulf %24, %39 : vector<32x18xf32>
    %44 = arith.addf %42, %43 : vector<32x18xf32>
    %45 = math.tanh %44 : vector<32x18xf32>
    %46 = arith.mulf %38, %45 : vector<32x18xf32>
    %c0_18 = arith.constant 0 : index
    %c0_19 = arith.constant 0 : index
    %c0_20 = arith.constant 0 : index
    %47 = vector.load %arg5[%c0_18, %c0_19, %c0_20] : memref<1x32x18xf32, #tpu.memory_space<vmem>>, vector<1x32x18xf32>
    %48 = vector.shape_cast %47 : vector<1x32x18xf32> to vector<32x18xf32>
    %49 = vector.shape_cast %44 : vector<32x18xf32> to vector<1x32x18xf32>
    tpu.vector_store %arg5[%c0_18, %c0_19, %c0_20], %49 {strides = array<i32>} : memref<1x32x18xf32, #tpu.memory_space<vmem>>, vector<1x32x18xf32>,
    %c0_21 = arith.constant 0 : index
    %c0_22 = arith.constant 0 : index
    %c0_23 = arith.constant 0 : index
    %50 = vector.load %arg6[%c0_21, %c0_22, %c0_23] : memref<1x32x18xf32, #tpu.memory_space<vmem>>, vector<1x32x18xf32>
    %51 = vector.shape_cast %50 : vector<1x32x18xf32> to vector<32x18xf32>
    %52 = vector.shape_cast %46 : vector<32x18xf32> to vector<1x32x18xf32>
    tpu.vector_store %arg6[%c0_21, %c0_22, %c0_23], %52 {strides = array<i32>} : memref<1x32x18xf32, #tpu.memory_space<vmem>>, vector<1x32x18xf32>,
    return
  }
  func.func @transform_0(%arg0: i32) -> (i32, i32, i32) {
    %c0_i32 = arith.constant 0 : i32
    %c0_i32_0 = arith.constant 0 : i32
    %c0_i32_1 = arith.constant 0 : i32
    return %arg0, %c0_i32, %c0_i32_0 : i32, i32, i32
  }
  func.func @transform_1(%arg0: i32) -> (i32, i32, i32) {
    %c0_i32 = arith.constant 0 : i32
    %c0_i32_0 = arith.constant 0 : i32
    %c0_i32_1 = arith.constant 0 : i32
    return %arg0, %c0_i32, %c0_i32_0 : i32, i32, i32
  }
  func.func @transform_2(%arg0: i32) -> (i32, i32) {
    %c0_i32 = arith.constant 0 : i32
    %c0_i32_0 = arith.constant 0 : i32
    %c0_i32_1 = arith.constant 0 : i32
    return %c0_i32, %c0_i32_0 : i32, i32
  }
  func.func @transform_3(%arg0: i32) -> (i32, i32) {
    %c0_i32 = arith.constant 0 : i32
    %c0_i32_0 = arith.constant 0 : i32
    %c0_i32_1 = arith.constant 0 : i32
    return %c0_i32, %c0_i32_0 : i32, i32
  }
  func.func @transform_4(%arg0: i32) -> (i32, i32, i32) {
    %c0_i32 = arith.constant 0 : i32
    %c0_i32_0 = arith.constant 0 : i32
    %c0_i32_1 = arith.constant 0 : i32
    return %arg0, %c0_i32, %c0_i32_0 : i32, i32, i32
  }
  func.func @transform_5(%arg0: i32) -> (i32, i32, i32) {
    %c0_i32 = arith.constant 0 : i32
    %c0_i32_0 = arith.constant 0 : i32
    %c0_i32_1 = arith.constant 0 : i32
    return %arg0, %c0_i32, %c0_i32_0 : i32, i32, i32
  }
}

</mosaic_0001>

<bundles_post_ra>
// kernel: conv1d_lstm_cell.1
= control target key start
LH: loop header
LB: loop body
LE: loop exit
PB: predicated region body
PF: predicated region fallthrough
CT: control target
= control target key end

     0   :  { %s969_s18 = smov 0   ;;  %s1199_s0 = inlined_call_operand.vmem [shape: f32[2,40,18], index: 0, kind: input, shape index: {}]   ;;  %s1200_s1 = inlined_call_operand.vmem [shape: f32[2,32,18], index: 1, kind: input, shape index: {}]   ;;  %s1201_s2 = inlined_call_operand.vmem [shape: f32[128,120], index: 2, kind: input, shape index: {}]   ;;  %s1202_s3 = inlined_call_operand.vmem [shape: f32[128,1], index: 3, kind: input, shape index: {}]   ;;  %s1203_s4 = inlined_call_operand.vmem [shape: f32[2,32,18], index: 4, kind: output, shape index: {0}]   ;;  %s1204_s5 = inlined_call_operand.vmem [shape: f32[2,32,18], index: 5, kind: output, shape index: {1}]  }
   0x1 LB: > { %s751_s19 = sadd.s32 4294967295, %s932_s18   ;;  %p755_p0 = scmp.ge.s32.totalorder %s932_s18, 1  ;;  %s932_s18 = sphi %s969_s18, %s16_s18  }
   0x2   : > { %p200_p1 = scmp.lt.s32.totalorder %s932_s18, 3 }
   0x4   : > { %p201_p2 = pnand %p755_p0, %p200_p1 }
   0x5   : > { %p238_p3 = scmp.lt.s32.totalorder (!%p201_p2), %s751_s19, 1  ;;  %s934_s24 = smov (!%p201_p2), 126  }
   0x6   : > { %204 = sbr.rel (%p201_p2) target bundleno = 357 (0x165), region = 36  ;;  %s935_s25 = smov (!%p201_p2), 16  }
   0x7   : > { %s936_s26 = smov (!%p201_p2), 127   ;;  %s937_s27 = smov (!%p201_p2), 17  }
   0xb   : > { %s1206_s19 = smov (!%p238_p3, %s751_s19), 1  ;;  %v938_v7 = vmov 0   ;;  %v357_v8 = vld [vmem:[%s1202_s3 + $0x8] sm:$0xff]  ;;  %v359_v9 = vld [vmem:[%s1202_s3 + $0x18] sm:$0xff]  ;;  %v356_v10 = vld [vmem:[%s1202_s3] sm:$0xff]  ;;  %vm334_vm0 = vcmask 130048  }
   0xc   : > { %s829_s20 = smul.u32 40, %s1206_s19  ;;  %884 = vset.pattern.permute.xlu1 %v938_v7  ;;  %883 = vset.pattern.permute.xlu0 %v938_v7  ;;  %v362_v11 = vld [vmem:[%s1202_s3 + $0x30] sm:$0xff]  ;;  %v361_v15 = vld [vmem:[%s1202_s3 + $0x28] sm:$0xff]  ;;  %v368_v23 = vld [vmem:[%s1202_s3 + $0x60] sm:$0xff]  ;;  %vm298_vm1 = vcmask 138240   ;;  %vm452_vm2 = vcmask 982016  }
   0xd   : > { %885 = vset.pattern.permute.xlu2 %v938_v7  ;;  %v369_v16 = vld [vmem:[%s1202_s3 + $0x68] sm:$0xff]  ;;  %v364_v24 = vld [vmem:[%s1202_s3 + $0x40] sm:$0xff]  ;;  %v371_v44 = vld [vmem:[%s1202_s3 + $0x78] sm:$0xff]  ;;  %vm642_vm3 = vcmask 146432  }
   0xe   : > { %s242_s23 = scalar_lea.vmem %s1199_s0, %s829_s20  ;;  %v367_v45 = vld [vmem:[%s1202_s3 + $0x58] sm:$0xff]  ;;  %v358_v47 = vld [vmem:[%s1202_s3 + $0x10] sm:$0xff]  ;;  %v340_v57 = vld [vmem:[%s1201_s2] sm:$0xff] }
   0xf   : > { %v983_v0 = vld [vmem:[%s242_s23 + $0x18] sm:$0xff]  ;;  %v985_v1 = vld [vmem:[%s242_s23 + $0x20] sm:$0xff]  ;;  %v987_v2 = vld [vmem:[%s242_s23 + $0x8] sm:$0xff] }
  0x10   : > { %v843_v3 = vpack.i.bf16 %v983_v0, %v985_v1  ;;  %v991_v4 = vld [vmem:[%s242_s23 + $0x10] sm:$0xff]  ;;  %v993_v5 = vld [vmem:[%s242_s23] sm:$0xff]  ;;  %v341_v63 = vld [vmem:[%s1201_s2 + $0x8] sm:$0xff]  ;;  %s1150_s23 = sshll.u32 %s1206_s19, 5 }
  0x11   : > { %v853_v6 = vpack.i.bf16 %v987_v2, %v991_v4  ;;  %304 = vrot.lane.b32.xlu2 %v993_v5, %s934_s24  ;;  %v344_v58 = vld [vmem:[%s1201_s2 + $0x20] sm:$0xff]  ;;  %v366_v61 = vld [vmem:[%s1202_s3 + $0x50] sm:$0xff]  ;;  %s1165_s28 = scalar_lea.vmem %s1203_s4, %s1150_s23  ;;  %s1177_s6 = scalar_lea.vmem %s1204_s5, %s1150_s23 }
  0x12   : > { %844 = vrot.lane.b32.xlu0 %v843_v3, %s934_s24  ;;  %v348_v59 = vld [vmem:[%s1201_s2 + $0x40] sm:$0xff]  ;;  %v354_v7 = vld [vmem:[%s1201_s2 + $0x70] sm:$0xff] }
  0x13   : > { %854 = vrot.lane.b32.xlu1 %v853_v6, %s934_s24  ;;  %v352_v60 = vld [vmem:[%s1201_s2 + $0x60] sm:$0xff] }
  0x14   : > { %v360_v62 = vld [vmem:[%s1202_s3 + $0x20] sm:$0xff] }
  0x19   : > { %319 = vrot.lane.b32.xlu2 %v993_v5, %s935_s25 }
  0x1a   : > { %849 = vrot.lane.b32.xlu0 %v843_v3, %s935_s25 }
  0x1b   : > { %859 = vrot.lane.b32.xlu1 %v853_v6, %s935_s25 }
  0x21   : > { %874 = vrot.lane.b32.xlu2 %v853_v6, %s936_s26 }
  0x22   : > { %864 = vrot.lane.b32.xlu0 %v843_v3, %s936_s26 }
  0x23   : > { %869 = vrot.lane.b32.xlu1 %v843_v3, %s937_s27  ;;  %v363_v3 = vld [vmem:[%s1202_s3 + $0x38] sm:$0xff] }
  0x29   : > { %283 = vrot.lane.b32.xlu2 %v993_v5, %s937_s27 }
  0x2a   : > { %879 = vrot.lane.b32.xlu0 %v853_v6, %s937_s27  ;;  %v350_v6 = vld [vmem:[%s1201_s2 + $0x50] sm:$0xff] }
  0x2b   : > { %268 = vrot.lane.b32.xlu1 %v993_v5, %s936_s26  ;;  %s1156_s26 = scalar_lea.vmem %s1200_s1, %s1150_s23 }
  0x31   : > { %384 = vperm.xlu2 %885, %v358_v47  }
  0x32   : > { %374 = vperm.xlu0 %883, %v356_v10   ;;  %v347_v10 = vld [vmem:[%s1201_s2 + $0x38] sm:$0xff] }
  0x33   : > { %379 = vperm.xlu1 %884, %v357_v8   ;;  %v370_v8 = vld [vmem:[%s1202_s3 + $0x70] sm:$0xff] }
  0x39   : > { %394 = vperm.xlu2 %885, %v360_v62  }
  0x3a   : > { %399 = vperm.xlu0 %883, %v361_v15  }
  0x3b   : > { %389 = vperm.xlu1 %884, %v359_v9   ;;  %v343_v9 = vld [vmem:[%s1201_s2 + $0x18] sm:$0xff] }
  0x41   : > { %409 = vperm.xlu2 %885, %v363_v3  }
  0x42   : > { %434 = vperm.xlu0 %883, %v368_v23  }
  0x43   : > { %404 = vperm.xlu1 %884, %v362_v11   ;;  %v351_v11 = vld [vmem:[%s1201_s2 + $0x58] sm:$0xff] }
  0x49   : > { %444 = vperm.xlu2 %885, %v370_v8  }
  0x4a   : > { %449 = vperm.xlu0 %883, %v371_v44  }
  0x4b   : > { %439 = vperm.xlu1 %884, %v369_v16  }
  0x52   : > { %424 = vperm.xlu0 %883, %v366_v61  }
  0x53   : > { %414 = vperm.xlu1 %884, %v364_v24  }
  0x5b   : > { %429 = vperm.xlu1 %884, %v367_v45  }
  0x6b   : > { %v305_v12 = vpop.permute.xlu2 %304 }
  0x73   : > { %v320_v17 = vpop.permute.xlu2 %319 }
  0x74   : > { %v335_v39 = vsel %vm334_vm0, %v305_v12, %v320_v17  ;;  %v355_v12 = vld [vmem:[%s1201_s2 + $0x78] sm:$0xff] }
  0x7b   : > { %v875_v34 = vpop.permute.xlu2 %874 }
  0x7c   : > { %v876_v48 = vunpack.i.l.bf16 %v875_v34  ;;  %v877_v53 = vunpack.i.h.bf16 %v875_v34 }
  0x83   : > { %v284_v52 = vpop.permute.xlu2 %283 }
  0x84   : > { %v845_v13 = vpop.permute.xlu0 %844 }
  0x85   : > { %v855_v14 = vpop.permute.xlu1 %854  ;;  %v846_v19 = vunpack.i.l.bf16 %v845_v13  ;;  %v847_v25 = vunpack.i.h.bf16 %v845_v13  ;;  %v365_v13 = vld [vmem:[%s1202_s3 + $0x48] sm:$0xff] }
  0x86   : > { %v856_v28 = vunpack.i.l.bf16 %v855_v14  ;;  %v857_v31 = vunpack.i.h.bf16 %v855_v14  ;;  %419 = vperm.xlu2 %885, %v365_v13  }
  0x8b   : > { %v385_v15 = vpop.permute.xlu2 %384 }
  0x8c   : > { %v850_v18 = vpop.permute.xlu0 %849 }
  0x8d   : > { %v852_v20 = vunpack.i.h.bf16 %v850_v18  ;;  %v851_v21 = vunpack.i.l.bf16 %v850_v18  ;;  %v860_v22 = vpop.permute.xlu1 %859 }
  0x8e   : > { %v861_v26 = vunpack.i.l.bf16 %v860_v22  ;;  %v862_v29 = vunpack.i.h.bf16 %v860_v22 }
  0x8f   : > { %v339_v27 = vsel %vm334_vm0, %v846_v19, %v851_v21  ;;  %v338_v30 = vsel %vm334_vm0, %v847_v25, %v852_v20 }
  0x90   : > { %502 = vmatpush.msra.mxu0 %v339_v27  ;;  %784 = vmatpush.msra.mxu1 %v339_v27  ;;  %v337_v32 = vsel %vm334_vm0, %v856_v28, %v861_v26  ;;  %v336_v37 = vsel %vm334_vm0, %v857_v31, %v862_v29 }
  0x91   : > { %785 = vmatpush.msra.mxu2 %v339_v27  ;;  %786 = vmatpush.msra.mxu3 %v339_v27 }
  0x92   : > { %503 = vmatpush.msra.mxu0 %v338_v30  ;;  %787 = vmatpush.msra.mxu1 %v338_v30 }
  0x93   : > { %788 = vmatpush.msra.mxu2 %v338_v30  ;;  %789 = vmatpush.msra.mxu3 %v338_v30  ;;  %v395_v18 = vpop.permute.xlu2 %394 }
  0x94   : > { %v865_v33 = vpop.permute.xlu0 %864  ;;  %504 = vmatpush.msra.mxu0 %v337_v32  ;;  %790 = vmatpush.msra.mxu1 %v337_v32 }
  0x95   : > { %v866_v35 = vunpack.i.l.bf16 %v865_v33  ;;  %v870_v36 = vpop.permute.xlu1 %869  ;;  %791 = vmatpush.msra.mxu2 %v337_v32  ;;  %792 = vmatpush.msra.mxu3 %v337_v32  ;;  %v867_v40 = vunpack.i.h.bf16 %v865_v33 }
  0x96   : > { %v871_v38 = vunpack.i.l.bf16 %v870_v36  ;;  %505 = vmatpush.msra.mxu0 %v336_v37  ;;  %793 = vmatpush.msra.mxu1 %v336_v37  ;;  %v872_v41 = vunpack.i.h.bf16 %v870_v36 }
  0x97   : > { %794 = vmatpush.msra.mxu2 %v336_v37  ;;  %795 = vmatpush.msra.mxu3 %v336_v37 }
  0x98   : > { %506 = vmatpush.msra.mxu0 %v335_v39  ;;  %796 = vmatpush.msra.mxu1 %v335_v39  ;;  %v303_v42 = vsel %vm298_vm1, %v866_v35, %v871_v38  ;;  %v302_v43 = vsel %vm298_vm1, %v867_v40, %v872_v41 }
  0x99   : > { %797 = vmatpush.msra.mxu2 %v335_v39  ;;  %798 = vmatpush.msra.mxu3 %v335_v39 }
  0x9a   : > { %507 = vmatpush.msra.mxu0 %v303_v42  ;;  %799 = vmatpush.msra.mxu1 %v303_v42 }
  0x9b   : > { %800 = vmatpush.msra.mxu2 %v303_v42  ;;  %801 = vmatpush.msra.mxu3 %v303_v42  ;;  %v1145_v21 = vpop.permute.xlu2 %409 }
  0x9c   : > { %v880_v46 = vpop.permute.xlu0 %879  ;;  %508 = vmatpush.msra.mxu0 %v302_v43  ;;  %802 = vmatpush.msra.mxu1 %v302_v43 }
  0x9d   : > { %v882_v49 = vunpack.i.h.bf16 %v880_v46  ;;  %v881_v50 = vunpack.i.l.bf16 %v880_v46  ;;  %803 = vmatpush.msra.mxu2 %v302_v43  ;;  %804 = vmatpush.msra.mxu3 %v302_v43  ;;  %v269_v51 = vpop.permute.xlu1 %268 }
  0x9e   : > { %v299_v55 = vsel %vm298_vm1, %v269_v51, %v284_v52 }
  0x9f   : > { %v301_v54 = vsel %vm298_vm1, %v876_v48, %v881_v50  ;;  %v300_v56 = vsel %vm298_vm1, %v877_v53, %v882_v49  ;;  %v618_v49 = vld [vmem:[%s1156_s26] sm:$0xff] }
  0xa0   : > { %509 = vmatpush.msra.mxu0 %v301_v54  ;;  %805 = vmatpush.msra.mxu1 %v301_v54 }
  0xa1   : > { %806 = vmatpush.msra.mxu2 %v301_v54  ;;  %807 = vmatpush.msra.mxu3 %v301_v54 }
  0xa2   : > { %510 = vmatpush.msra.mxu0 %v300_v56  ;;  %808 = vmatpush.msra.mxu1 %v300_v56 }
  0xa3   : > { %809 = vmatpush.msra.mxu2 %v300_v56  ;;  %810 = vmatpush.msra.mxu3 %v300_v56  ;;  %v1147_v30 = vpop.permute.xlu2 %444 }
  0xa4   : > { %511 = vmatpush.msra.mxu0 %v299_v55  ;;  %811 = vmatpush.msra.mxu1 %v299_v55  ;;  %v375_v17 = vpop.permute.xlu0 %374 }
  0xa5   : > { %812 = vmatpush.msra.mxu2 %v299_v55  ;;  %813 = vmatpush.msra.mxu3 %v299_v55  ;;  %v380_v14 = vpop.permute.xlu1 %379 }
  0xa6   : > { %512 = vmatpush.msra.mxu0 %v985_v1  ;;  %814 = vmatpush.msra.mxu1 %v985_v1 }
  0xa7   : > { %815 = vmatpush.msra.mxu2 %v985_v1  ;;  %816 = vmatpush.msra.mxu3 %v985_v1  ;;  %v349_v1 = vld [vmem:[%s1201_s2 + $0x48] sm:$0xff] }
  0xa8   : > { %513 = vmatpush.msra.mxu0 %v983_v0  ;;  %817 = vmatpush.msra.mxu1 %v983_v0 }
  0xa9   : > { %818 = vmatpush.msra.mxu2 %v983_v0  ;;  %819 = vmatpush.msra.mxu3 %v983_v0  ;;  %v345_v0 = vld [vmem:[%s1201_s2 + $0x28] sm:$0xff] }
  0xaa   : > { %514 = vmatpush.msra.mxu0 %v991_v4  ;;  %820 = vmatpush.msra.mxu1 %v991_v4 }
  0xab   : > { %821 = vmatpush.msra.mxu2 %v991_v4  ;;  %822 = vmatpush.msra.mxu3 %v991_v4  ;;  %v342_v4 = vld [vmem:[%s1201_s2 + $0x10] sm:$0xff] }
  0xac   : > { %515 = vmatpush.msra.mxu0 %v987_v2  ;;  %823 = vmatpush.msra.mxu1 %v987_v2  ;;  %v400_v20 = vpop.permute.xlu0 %399 }
  0xad   : > { %824 = vmatpush.msra.mxu2 %v987_v2  ;;  %825 = vmatpush.msra.mxu3 %v987_v2  ;;  %v353_v2 = vld [vmem:[%s1201_s2 + $0x68] sm:$0xff]  ;;  %v1143_v16 = vpop.permute.xlu1 %389 }
  0xae   : > { %516 = vmatpush.msra.mxu0 %v993_v5  ;;  %826 = vmatpush.msra.mxu1 %v993_v5 }
  0xaf   : > { %827 = vmatpush.msra.mxu2 %v993_v5  ;;  %828 = vmatpush.msra.mxu3 %v993_v5  ;;  %v346_v5 = vld [vmem:[%s1201_s2 + $0x30] sm:$0xff] }
  0xb0   : > { %763 = vmatmul.msk.f32.vlgmr.msra.gmra.mxu0 %vm452_vm2, %v340_v57  ;;  %767 = vmatmul.msk.f32.vlgmr.msra.gmra.mxu1 %vm452_vm2, %v344_v58 }
  0xb1   : > { %771 = vmatmul.msk.f32.vlgmr.msra.gmra.mxu2 %vm452_vm2, %v348_v59  ;;  %775 = vmatmul.msk.f32.vlgmr.msra.gmra.mxu3 %vm452_vm2, %v352_v60 }
  0xb4   : > { %v435_v27 = vpop.permute.xlu0 %434 }
  0xb5   : > { %v405_v19 = vpop.permute.xlu1 %404 }
  0xb8   : > { %764 = vmatmul.msk.f32.gmra.mxu0 %vm452_vm2, %v341_v63  ;;  %768 = vmatmul.msk.f32.gmra.mxu1 %vm452_vm2, %v345_v0 }
  0xb9   : > { %772 = vmatmul.msk.f32.gmra.mxu2 %vm452_vm2, %v349_v1  ;;  %776 = vmatmul.msk.f32.gmra.mxu3 %vm452_vm2, %v353_v2 }
  0xbc   : > { %v1158_v45 = vpop.permute.xlu0 %449 }
  0xbd   : > { %v440_v22 = vpop.permute.xlu1 %439 }
  0xc0   : > { %765 = vmatmul.msk.f32.gmra.mxu0 %vm452_vm2, %v342_v4  ;;  %769 = vmatmul.msk.f32.gmra.mxu1 %vm452_vm2, %v346_v5 }
  0xc1   : > { %773 = vmatmul.msk.f32.gmra.mxu2 %vm452_vm2, %v350_v6  ;;  %777 = vmatmul.msk.f32.gmra.mxu3 %vm452_vm2, %v354_v7 }
  0xc4   : > { %v425_v8 = vpop.permute.xlu0 %424 }
  0xc5   : > { %v415_v31 = vpop.permute.xlu1 %414 }
  0xc8   : > { %766 = vmatmul.msk.f32.gmra.mxu0 %vm452_vm2, %v343_v9  ;;  %770 = vmatmul.msk.f32.gmra.mxu1 %vm452_vm2, %v347_v10 }
  0xc9   : > { %774 = vmatmul.msk.f32.gmra.mxu2 %vm452_vm2, %v351_v11  ;;  %778 = vmatmul.msk.f32.gmra.mxu3 %vm452_vm2, %v355_v12  ;;  %v619_v11 = vld [vmem:[%s1156_s26 + $0x8] sm:$0xff] }
  0xe0   : > { %v420_v50 = vpop.permute.xlu2 %419 }
 0x12d   : > { %v518_v23 = vpop.f32.mrf.mxu0  ;;  %v530_v24 = vpop.f32.mrf.mxu1 }
 0x12e   : > { %v519_v25 = vadd.f32 %v518_v23, %v375_v17  ;;  %v531_v26 = vadd.f32 %v530_v24, %v395_v18 }
 0x130   : > { %v566_v28 = vmul.f32 0.5, %v519_v25  ;;  %v582_v29 = vmul.f32 0.5, %v531_v26 }
 0x132   : > { %886 = vtanh.f32 %v566_v28 }
 0x133   : > { %888 = vtanh.f32 %v582_v29 }
 0x134   : > { %v542_v32 = vpop.f32.mrf.mxu2  ;;  %v554_v33 = vpop.f32.mrf.mxu3 }
 0x135   : > { %v543_v34 = vadd.f32 %v542_v32, %v415_v31  ;;  %v555_v35 = vadd.f32 %v554_v33, %v435_v27  ;;  %v521_v36 = vpop.f32.mrf.mxu0  ;;  %v533_v37 = vpop.f32.mrf.mxu1 }
 0x136   : > { %v522_v38 = vadd.f32 %v521_v36, %v380_v14  ;;  %v534_v39 = vadd.f32 %v533_v37, %v400_v20 }
 0x137   : > { %v598_v40 = vmul.f32 0.5, %v543_v34  ;;  %890 = vtanh.f32 %v555_v35  ;;  %v430_v35 = vpop.permute.xlu1 %429 }
 0x138   : > { %v887_v41 = vpop.eup %886  ;;  %v567_v42 = vmul.f32 0.5, %v522_v38  ;;  %v583_v43 = vmul.f32 0.5, %v534_v39  ;;  %v620_v39 = vld [vmem:[%s1156_s26 + $0x10] sm:$0xff] }
 0x139   : > { %v889_v44 = vpop.eup %888  ;;  %v574_v46 = vmul.f32 0.5, %v887_v41  ;;  %892 = vtanh.f32 %v598_v40 }
 0x13a   : > { %v590_v47 = vmul.f32 0.5, %v889_v44  ;;  %894 = vtanh.f32 %v567_v42 }
 0x13b   : > { %v578_v48 = vadd.f32 0.5, %v574_v46  ;;  %896 = vtanh.f32 %v583_v43 }
 0x13c   : > { %v594_v51 = vadd.f32 0.5, %v590_v47  ;;  %v545_v52 = vpop.f32.mrf.mxu2  ;;  %v557_v53 = vpop.f32.mrf.mxu3 }
 0x13d   : > { %v891_v54 = vpop.eup %890  ;;  %v546_v55 = vadd.f32 %v545_v52, %v420_v50  ;;  %v558_v56 = vadd.f32 %v557_v53, %v440_v22  ;;  %v524_v57 = vpop.f32.mrf.mxu0 }
 0x13e   : > { %v536_v58 = vpop.f32.mrf.mxu1  ;;  %v622_v59 = vmul.f32 %v618_v49, %v594_v51  ;;  %v626_v60 = vmul.f32 %v891_v54, %v578_v48  ;;  %v525_v61 = vadd.f32 %v524_v57, %v385_v15 }
 0x13f   : > { %v537_v62 = vadd.f32 %v536_v58, %v405_v19  ;;  %v893_v63 = vpop.eup %892  ;;  %v599_v0 = vmul.f32 0.5, %v546_v55  ;;  %898 = vtanh.f32 %v558_v56 }
 0x140   : > { %v895_v1 = vpop.eup %894  ;;  %v630_v2 = vadd.f32 %v626_v60, %v622_v59  ;;  %v568_v3 = vmul.f32 0.5, %v525_v61  ;;  %v606_v9 = vmul.f32 0.5, %v893_v63  ;;  %v621_v60 = vld [vmem:[%s1156_s26 + $0x18] sm:$0xff] }
 0x141   : > { %v584_v4 = vmul.f32 0.5, %v537_v62  ;;  %v897_v5 = vpop.eup %896  ;;  %v575_v6 = vmul.f32 0.5, %v895_v1  ;;  %900 = vtanh.f32 %v599_v0 }
 0x142   : > { %902 = vtanh.f32 %v630_v2  ;;  %643 = vst.msk [vmem:[%s1165_s28] sm:$0xff] %vm642_vm3, %v630_v2  ;;  %v591_v7 = vmul.f32 0.5, %v897_v5  ;;  %v610_v27 = vadd.f32 0.5, %v606_v9 }
 0x143   : > { %v579_v10 = vadd.f32 0.5, %v575_v6  ;;  %904 = vtanh.f32 %v568_v3 }
 0x144   : > { %v595_v12 = vadd.f32 0.5, %v591_v7  ;;  %906 = vtanh.f32 %v584_v4  ;;  %v548_v13 = vpop.f32.mrf.mxu2  ;;  %v560_v14 = vpop.f32.mrf.mxu3 }
 0x145   : > { %v899_v15 = vpop.eup %898  ;;  %v549_v17 = vadd.f32 %v548_v13, %v425_v8  ;;  %v561_v18 = vadd.f32 %v560_v14, %v1147_v30  ;;  %v527_v19 = vpop.f32.mrf.mxu0 }
 0x146   : > { %v539_v20 = vpop.f32.mrf.mxu1  ;;  %v623_v22 = vmul.f32 %v619_v11, %v595_v12  ;;  %v627_v23 = vmul.f32 %v899_v15, %v579_v10  ;;  %v528_v24 = vadd.f32 %v527_v19, %v1143_v16 }
 0x147   : > { %v540_v25 = vadd.f32 %v539_v20, %v1145_v21  ;;  %v901_v26 = vpop.eup %900  ;;  %v600_v28 = vmul.f32 0.5, %v549_v17  ;;  %908 = vtanh.f32 %v561_v18 }
 0x148   : > { %v903_v29 = vpop.eup %902  ;;  %v631_v30 = vadd.f32 %v627_v23, %v623_v22  ;;  %v569_v31 = vmul.f32 0.5, %v528_v24  ;;  %v607_v36 = vmul.f32 0.5, %v901_v26 }
 0x149   : > { %v585_v32 = vmul.f32 0.5, %v540_v25  ;;  %v905_v33 = vpop.eup %904  ;;  %v638_v16 = vmul.f32 %v903_v29, %v610_v27  ;;  %910 = vtanh.f32 %v600_v28 }
 0x14a   : > { %v907_v34 = vpop.eup %906  ;;  %912 = vtanh.f32 %v631_v30  ;;  %644 = vst.msk [vmem:[%s1165_s28 + $0x8] sm:$0xff] %vm642_vm3, %v631_v30  ;;  %v576_v21 = vmul.f32 0.5, %v905_v33  ;;  %v611_v49 = vadd.f32 0.5, %v607_v36 }
 0x14b   : > { %647 = vst.msk [vmem:[%s1177_s6] sm:$0xff] %vm642_vm3, %v638_v16  ;;  %v592_v37 = vmul.f32 0.5, %v907_v34  ;;  %914 = vtanh.f32 %v569_v31 }
 0x14c   : > { %v580_v38 = vadd.f32 0.5, %v576_v21  ;;  %916 = vtanh.f32 %v585_v32  ;;  %v551_v40 = vpop.f32.mrf.mxu2  ;;  %v563_v41 = vpop.f32.mrf.mxu3 }
 0x14d   : > { %v909_v42 = vpop.eup %908  ;;  %v596_v43 = vadd.f32 0.5, %v592_v37  ;;  %v552_v44 = vadd.f32 %v551_v40, %v430_v35  ;;  %v564_v46 = vadd.f32 %v563_v41, %v1158_v45 }
 0x14e   : > { %v628_v47 = vmul.f32 %v909_v42, %v580_v38 }
 0x14f   : > { %v911_v48 = vpop.eup %910  ;;  %v624_v50 = vmul.f32 %v620_v39, %v596_v43  ;;  %v601_v51 = vmul.f32 0.5, %v552_v44  ;;  %918 = vtanh.f32 %v564_v46 }
 0x150   : > { %v913_v52 = vpop.eup %912  ;;  %v608_v58 = vmul.f32 0.5, %v911_v48 }
 0x151   : > { %v915_v53 = vpop.eup %914  ;;  %v639_v54 = vmul.f32 %v913_v52, %v611_v49  ;;  %v632_v55 = vadd.f32 %v628_v47, %v624_v50  ;;  %920 = vtanh.f32 %v601_v51 }
 0x152   : > { %v917_v56 = vpop.eup %916  ;;  %v577_v57 = vmul.f32 0.5, %v915_v53  ;;  %v612_v2 = vadd.f32 0.5, %v608_v58 }
 0x153   : > { %648 = vst.msk [vmem:[%s1177_s6 + $0x8] sm:$0xff] %vm642_vm3, %v639_v54  ;;  %922 = vtanh.f32 %v632_v55  ;;  %v593_v45 = vmul.f32 0.5, %v917_v56 }
 0x154   : > { %645 = vst.msk [vmem:[%s1165_s28 + $0x10] sm:$0xff] %vm642_vm3, %v632_v55  ;;  %v581_v59 = vadd.f32 0.5, %v577_v57 }
 0x155   : > { %v919_v61 = vpop.eup %918  ;;  %v597_v62 = vadd.f32 0.5, %v593_v45 }
 0x156   : > { %v629_v63 = vmul.f32 %v919_v61, %v581_v59 }
 0x157   : > { %v625_v0 = vmul.f32 %v621_v60, %v597_v62  ;;  %v921_v1 = vpop.eup %920 }
 0x158   : > { %v609_v6 = vmul.f32 0.5, %v921_v1 }
 0x159   : > { %v923_v3 = vpop.eup %922  ;;  %v633_v4 = vadd.f32 %v629_v63, %v625_v0 }
 0x15a   : > { %v640_v5 = vmul.f32 %v923_v3, %v612_v2  ;;  %v613_v7 = vadd.f32 0.5, %v609_v6 }
 0x15b   : > { %924 = vtanh.f32 %v633_v4  ;;  %646 = vst.msk [vmem:[%s1165_s28 + $0x18] sm:$0xff] %vm642_vm3, %v633_v4 }
 0x15c   : > { %649 = vst.msk [vmem:[%s1177_s6 + $0x10] sm:$0xff] %vm642_vm3, %v640_v5 }
 0x161   : > { %v925_v8 = vpop.eup %924 }
 0x162   : > { %v641_v9 = vmul.f32 %v925_v8, %v613_v7 }
 0x164   : > { %650 = vst.msk [vmem:[%s1177_s6 + $0x18] sm:$0xff] %vm642_vm3, %v641_v9 }
 0x165 PF: > { %s16_s18 = sadd.s32 1, %s932_s18  }
 0x166   : > { %p13_p4 = scmp.ge.s32.totalorder %s16_s18, 4  }
 0x168   :  { %15 = sbr.rel (!%p13_p4) target bundleno = 1 (0x1), region = 81 }

</bundles_post_ra>
